<compile_context>
chip_gen: v6e
topology: v6e:2x2x1
jax: 0.10.0
libtpu: 0.0.40
codegen_flags: <defaults>
</compile_context>

<pallas_src>
import functools

import jax
import jax.numpy as jnp
from jax.experimental import pallas as pl
from jax.experimental.pallas import tpu as pltpu


def _round_up(x: int, m: int) -> int:
    return ((x + m - 1) // m) * m


def _choose_batch_block(B: int) -> int:
    """Largest divisor of B that is <= 8 (f32 sublane count), preferring a
    choice that leaves >= 2 iterations on the leading 'parallel' grid axis so
    both v7x TensorCores get work."""
    divisors = [d for d in range(1, min(8, B) + 1) if B % d == 0]
    two_core = [d for d in divisors if B // d >= 2]
    return max(two_core) if two_core else max(divisors)


def _full_s_kernel(x_ref, w_ref, b_ref, o_ref):
    # x_ref: [bB, C, S]   one batch block, full spatio-temporal extent
    # w_ref: [C, Np]      fused head weight (already scaled by 0.5 / S)
    # b_ref: [1, Np]      fused head bias   (already scaled by 0.5)
    # o_ref: [1, bB, Np]  fused logits for this batch block
    feat = jnp.sum(x_ref[...].astype(jnp.float32), axis=-1)          # [bB, C]
    o_ref[0] = (
        jnp.dot(feat, w_ref[...], preferred_element_type=jnp.float32)
        + b_ref[...]
    )


def _tiled_s_kernel(x_ref, w_ref, b_ref, o_ref, acc_ref, *, t_s, S):
    # x_ref  : [bB, C, t_s]  one S tile of one batch block
    # acc_ref: [bB, C, 1]    running raw sum over S (keepdims -> no per-tile
    #                        cross-lane relayout)
    s = pl.program_id(1)

    @pl.when(s == 0)
    def _():
        acc_ref[...] = jnp.zeros_like(acc_ref)

    x = x_ref[...].astype(jnp.float32)
    if S % t_s != 0:
        # Ragged last tile: mask out-of-range columns in-kernel instead of
        # padding x in HBM (padding would add a full extra read+write pass).
        col = jax.lax.broadcasted_iota(jnp.int32, x.shape, dimension=2)
        x = jnp.where(s * t_s + col < S, x, 0.0)
    acc_ref[...] += jnp.sum(x, axis=-1, keepdims=True)

    @pl.when(s == pl.num_programs(1) - 1)
    def _():
        feat = acc_ref[...].reshape(acc_ref.shape[0], acc_ref.shape[1])  # [bB, C]
        o_ref[0] = (
            jnp.dot(feat, w_ref[...], preferred_element_type=jnp.float32)
            + b_ref[...]
        )


def two_stream_forward(x, w1, b1, w2, b2, *, x_vmem_budget_bytes=24 * 1024 * 1024):
    """x: [B, C, T, H, W] (NCTHW, f32 or bf16). Returns [B, num_classes] f32."""
    B, C, T, H, W = x.shape
    num_classes = w1.shape[1]
    S = T * H * W

    # ---- fold the two linear heads + late fusion + mean divide (exact) ----
    w_fused = (w1 + w2).astype(jnp.float32) * (0.5 / S)                    # [C, N]
    b_fused = ((b1 + b2).astype(jnp.float32) * 0.5).reshape(1, num_classes)

    # ---- pad num_classes to a lane-dense multiple of 128 ----
    n_pad = _round_up(num_classes, 128)
    if n_pad != num_classes:
        w_fused = jnp.pad(w_fused, ((0, 0), (0, n_pad - num_classes)))
        b_fused = jnp.pad(b_fused, ((0, 0), (0, n_pad - num_classes)))

    x_flat = x.reshape(B, C, S)            # contiguous reshape: no HBM traffic
    itemsize = x.dtype.itemsize

    bB = _choose_batch_block(B)
    grid_b = B // bB

    out_shape = jax.ShapeDtypeStruct((grid_b, bB, n_pad), jnp.float32)
    full_block_bytes = bB * C * S * itemsize
    # TODO(synk): the fused weight/bias specs could use pl.Buffered(1) (their
    # index_map is constant so the second buffer is dead); left at the default
    # for maximum compatibility since the savings are small at head scale.

    if 2 * full_block_bytes <= x_vmem_budget_bytes:
        # ---- path A: full-S block, one contiguous DMA per batch block ----
        out = pl.pallas_call(
            _full_s_kernel,
            out_shape=out_shape,
            grid_spec=pltpu.PrefetchScalarGridSpec(
                num_scalar_prefetch=0,
                grid=(grid_b,),
                in_specs=[
                    pl.BlockSpec((bB, C, S), lambda b: (b, 0, 0)),
                    pl.BlockSpec((C, n_pad), lambda b: (0, 0)),
                    pl.BlockSpec((1, n_pad), lambda b: (0, 0)),
                ],
                out_specs=pl.BlockSpec((1, bB, n_pad), lambda b: (b, 0, 0)),
            ),
            compiler_params=pltpu.CompilerParams(
                dimension_semantics=("parallel",),
                # Keep well under v7x's 64 MiB physical VMEM; v5e/v6e have
                # 128 MiB physical so this is conservative there.
                vmem_limit_bytes=32 * 1024 * 1024,
            ),
        )(x_flat, w_fused, b_fused)
    else:
        # ---- path B: S tiling (large S); ragged last tile masked in-kernel ----
        t_s = (x_vmem_budget_bytes // (2 * bB * C * itemsize)) // 128 * 128
        t_s = max(128, min(t_s, _round_up(S, 128)))
        num_s_tiles = -(-S // t_s)                      # ceil, no HBM padding
        out = pl.pallas_call(
            functools.partial(_tiled_s_kernel, t_s=t_s, S=S),
            out_shape=out_shape,
            grid_spec=pltpu.PrefetchScalarGridSpec(
                num_scalar_prefetch=0,
                grid=(grid_b, num_s_tiles),
                in_specs=[
                    pl.BlockSpec((bB, C, t_s), lambda b, s: (b, 0, s)),
                    pl.BlockSpec((C, n_pad), lambda b, s: (0, 0)),
                    pl.BlockSpec((1, n_pad), lambda b, s: (0, 0)),
                ],
                out_specs=pl.BlockSpec((1, bB, n_pad), lambda b, s: (b, 0, 0)),
                scratch_shapes=[pltpu.VMEM((bB, C, 1), jnp.float32)],
            ),
            compiler_params=pltpu.CompilerParams(
                dimension_semantics=("parallel", "arbitrary"),
                vmem_limit_bytes=32 * 1024 * 1024,
            ),
        )(x_flat, w_fused, b_fused)

    return out.reshape(B, n_pad)[:, :num_classes]


def _reference(x, w1, b1, w2, b2):
    feat = jnp.mean(x.reshape(x.shape[0], x.shape[1], -1), axis=-1)
    x1 = feat @ w1 + b1
    x2 = feat @ w2 + b2
    return (x1 + x2) / 2.0


if __name__ == "__main__":
    # Small shapes consistent with an I3D-style video classifier.
    B, C, T, H, W = 2, 4, 8, 16, 16
    NUM_CLASSES = 32

    key = jax.random.PRNGKey(0)
    kx, kw1, kb1, kw2, kb2 = jax.random.split(key, 5)

    x = jax.random.normal(kx, (B, C, T, H, W), dtype=jnp.float32)
    # Deterministic synthetic parameters for the two stream heads.
    w1 = jax.random.normal(kw1, (C, NUM_CLASSES), dtype=jnp.float32) * 0.1
    b1 = jax.random.normal(kb1, (NUM_CLASSES,), dtype=jnp.float32) * 0.01
    w2 = jax.random.normal(kw2, (C, NUM_CLASSES), dtype=jnp.float32) * 0.1
    b2 = jax.random.normal(kb2, (NUM_CLASSES,), dtype=jnp.float32) * 0.01

    ref = _reference(x, w1, b1, w2, b2)

    # Preferred path: full-S contiguous blocks, no accumulator.
    out = jax.block_until_ready(two_stream_forward(x, w1, b1, w2, b2))
    assert out.shape == (B, NUM_CLASSES)
    assert jnp.allclose(out, ref, atol=1e-4, rtol=1e-4), "mismatch (full-S path)"

    # Also exercise the S-tiled fallback (tiny budget forces tiling with a
    # ragged, in-kernel-masked last tile; still no wrapper-side HBM pad).
    out_tiled = jax.block_until_ready(
        two_stream_forward(x, w1, b1, w2, b2, x_vmem_budget_bytes=24 * 1024))
    assert jnp.allclose(out_tiled, ref, atol=1e-4, rtol=1e-4), "mismatch (tiled path)"

    print("KERNEL_OK")
</pallas_src>

<mosaic_0001>
module attributes {stable_mosaic.version = 11 : i64} {
  func.func @_full_s_kernel(%arg0: i32, %arg1: memref<1x4x2048xf32, #tpu.memory_space<vmem>>, %arg2: memref<4x128xf32, #tpu.memory_space<vmem>>, %arg3: memref<1x128xf32, #tpu.memory_space<vmem>>, %arg4: memref<1x1x128xf32, #tpu.memory_space<vmem>>) attributes {dimension_semantics = [#tpu.dimension_semantics<parallel>], iteration_bounds = array<i64: 2>, scalar_prefetch = 0 : i64, scratch_operands = 0 : i64, tpu.core_type = #tpu.core_type<tc>, window_params = [{transform_indices = @transform_0, window_bounds = array<i64: 1, 4, 2048>}, {pipeline_mode = #tpu.pipeline_mode<synchronous>, transform_indices = @transform_1, window_bounds = array<i64: 4, 128>}, {pipeline_mode = #tpu.pipeline_mode<synchronous>, transform_indices = @transform_2, window_bounds = array<i64: 1, 128>}, {transform_indices = @transform_3, window_bounds = array<i64: 1, 1, 128>}]} {
    %c0 = arith.constant 0 : index
    %c0_0 = arith.constant 0 : index
    %c0_1 = arith.constant 0 : index
    %0 = vector.load %arg1[%c0, %c0_0, %c0_1] : memref<1x4x2048xf32, #tpu.memory_space<vmem>>, vector<1x4x2048xf32>
    %cst = arith.constant dense<0.000000e+00> : vector<1x4xf32>
    %1 = vector.multi_reduction <add>, %0, %cst [2] : vector<1x4x2048xf32> to vector<1x4xf32>
    %c0_2 = arith.constant 0 : index
    %c0_3 = arith.constant 0 : index
    %2 = vector.load %arg2[%c0_2, %c0_3] : memref<4x128xf32, #tpu.memory_space<vmem>>, vector<4x128xf32>
    %cst_4 = arith.constant dense<0.000000e+00> : vector<1x128xf32>
    %3 = tpu.matmul %1, %2, %cst_4 {dimension_numbers = #tpu.dot_dimension_numbers<[1], [0], [0], [1], [0, 0, 1, 1], [], []>} : vector<1x4xf32>, vector<4x128xf32>, vector<1x128xf32> -> vector<1x128xf32>
    %c0_5 = arith.constant 0 : index
    %c0_6 = arith.constant 0 : index
    %4 = vector.load %arg3[%c0_5, %c0_6] : memref<1x128xf32, #tpu.memory_space<vmem>>, vector<1x128xf32>
    %5 = arith.addf %3, %4 : vector<1x128xf32>
    %c0_7 = arith.constant 0 : index
    %c0_8 = arith.constant 0 : index
    %c0_9 = arith.constant 0 : index
    %6 = vector.load %arg4[%c0_7, %c0_8, %c0_9] : memref<1x1x128xf32, #tpu.memory_space<vmem>>, vector<1x1x128xf32>
    %7 = vector.shape_cast %6 : vector<1x1x128xf32> to vector<1x128xf32>
    %8 = vector.shape_cast %5 : vector<1x128xf32> to vector<1x1x128xf32>
    tpu.vector_store %arg4[%c0_7, %c0_8, %c0_9], %8 {strides = array<i32>} : memref<1x1x128xf32, #tpu.memory_space<vmem>>, vector<1x1x128xf32>,
    return
  }
  func.func @transform_0(%arg0: i32) -> (i32, i32, i32) {
    %c0_i32 = arith.constant 0 : i32
    %c0_i32_0 = arith.constant 0 : i32
    %c0_i32_1 = arith.constant 0 : i32
    return %arg0, %c0_i32, %c0_i32_0 : i32, i32, i32
  }
  func.func @transform_1(%arg0: i32) -> (i32, i32) {
    %c0_i32 = arith.constant 0 : i32
    %c0_i32_0 = arith.constant 0 : i32
    %c0_i32_1 = arith.constant 0 : i32
    return %c0_i32, %c0_i32_0 : i32, i32
  }
  func.func @transform_2(%arg0: i32) -> (i32, i32) {
    %c0_i32 = arith.constant 0 : i32
    %c0_i32_0 = arith.constant 0 : i32
    %c0_i32_1 = arith.constant 0 : i32
    return %c0_i32, %c0_i32_0 : i32, i32
  }
  func.func @transform_3(%arg0: i32) -> (i32, i32, i32) {
    %c0_i32 = arith.constant 0 : i32
    %c0_i32_0 = arith.constant 0 : i32
    %c0_i32_1 = arith.constant 0 : i32
    return %arg0, %c0_i32, %c0_i32_0 : i32, i32, i32
  }
}

</mosaic_0001>

<bundles_post_ra>
// kernel: tpu_custom_call.1
= control target key start
LH: loop header
LB: loop body
LE: loop exit
PB: predicated region body
PF: predicated region fallthrough
CT: control target
= control target key end

     0   :  { %8 = vsyncpa [#allocation3], 0  ;;  %s882_s0 = inlined_call_operand.hbm [shape: f32[2,4,2048], index: 0, kind: input, shape index: {}]   ;;  %s883_s1 = inlined_call_operand.hbm [shape: f32[4,128], index: 1, kind: input, shape index: {}]   ;;  %s884_s2 = inlined_call_operand.vmem [shape: f32[1,128], index: 2, kind: input, shape index: {}]   ;;  %s885_s3 = inlined_call_operand.hbm [shape: f32[2,1,128], index: 3, kind: output, shape index: {}]  }
   0x1   :  { %10 = vsyncpa [#allocation3 + $0x1], 0 }
   0x2   :  { %11 = vsyncpa [#allocation6], 0 }
   0x3   :  { %12 = vsyncpa [#allocation4], 0 }
   0x4   :  { %14 = vsyncpa [#allocation4 + $0x1], 0  ;;  %s679_s12 = smov 0   ;;  %s681_s13 = smov 0  }
   0x5   :  { %s683_s14 = smov 0   ;;  %s685_s15 = smov 0  }
   0x6 LB: > { %s700_s16 = sadd.s32 4294967295, %s652_s15   ;;  %s440_s17 = sadd.s32 4294967294, %s652_s15   ;;  %s652_s15 = sphi %s685_s15, %s908_s15   ;;  %s648_s14 = sphi %s683_s14, %s907_s14   ;;  %s644_s13 = sphi %s681_s13, %s906_s13   ;;  %s640_s12 = sphi %s679_s12, %s905_s12  }
   0x7   : > { %p40_p0 = scmp.ne.s32.totalorder %s644_s13, %s640_s12  ;;  %p886_p1 = scmp.eq.s32.totalorder %s700_s16, 0 }
   0x8   : > { %p112_p3 = scmp.eq.s32.totalorder %s440_s17, 1  ;;  %p441_p5 = scmp.ge.s32.totalorder %s652_s15, 1 }
   0x9   : > { %p709_p4 = por %p886_p1, %p40_p0  ;;  %p119_p7 = scmp.lt.s32.totalorder %s652_s15, 3 }
   0xa   : > { %p714_p6 = por %p112_p3, %p40_p0  ;;  %s654_s21 = smov [#allocation5]  }
   0xb   : > { %s890_s18 = scalar_select %p709_p4, 1, 0 }
   0xc   : > { %s891_s19 = scalar_select %p714_p6, 1, 0 }
   0xd   : > { %p719_p8 = pnand %p441_p5, %p119_p7  ;;  %s132_s22 = sshll.u32 %s654_s21, 4  ;;  %s133_s22 = int_to_ptr.vmem [resolvable:$true] %s132_s22 }
   0xe   : > { %s727_s23 = sadd.s32 1, %s652_s15   ;;  %s27_s27 = sadd.s32 1, %s648_s14 }
   0xf   : > { %s892_s20 = scalar_select %p719_p8, 1, 0 }
  0x10   : > { %p471_p10 = pneg %p719_p8  ;;  %s24_s25 = ssub.s32 %s652_s15, %s727_s23 }
  0x11   : > { %p737_p12 = scmp.eq.s32.totalorder %s24_s25, 0  ;;  %p34_p13 = scmp.ne.s32.totalorder %s648_s14, %s644_s13 }
  0x12   : > { %p731_p11 = pnand %p471_p10, %p886_p1  ;;  %s541_s28 = scalar_lea.vmem %s133_s22, 64 }
  0x13   : > { %p542_p3 = scmp.ne.s32.totalorder %s133_s22, %s541_s28  ;;  %p549_p9 = scmp.lt.s32.totalorder %s133_s22, %s133_s22 }
  0x14   : > { %p532_p0 = pneg %p731_p11  ;;  %p550_p2 = scmp.lt.s32.totalorder %s541_s28, %s541_s28 }
  0x16   : > { %p544_p5 = pnand %p542_p3, %p532_p0  ;;  %p551_p10 = por %p550_p2, %p549_p9 }
  0x18   : > { %p545_p7 = pneg %p544_p5 }
  0x1a   : > { %p552_p1 = pnand %p551_p10, %p545_p7 }
  0x1c   : > { %555 = shalt.err (!%p552_p1)
}
  0x1d   : > { %474 = dma.hbm_to_vmem [thread:$0]  (!%p731_p11), %s883_s1, 64, %s133_s22, [#allocation6]  }
  0x1e   : > { %s754_s4 = scalar_select %p737_p12, %s648_s14, %s27_s27  }
  0x1f   : > { %p35_p1 = scmp.eq.s32.totalorder %s652_s15, 0  ;;  %p895_p2 = scmp.eq.s32.totalorder %s700_s16, 1 }
  0x20   : > { %p484_p0 = scmp.lt.s32.totalorder %s652_s15, 2  ;;  %s146_s6 = sand.u32 1, %s648_s14  }
  0x21   : > { %p762_p9 = por %p895_p2, %p34_p13  ;;  %p36_p3 = por %p35_p1, %p34_p13 }
  0x22   : > { %s444_s7 = sshll.u32 %s146_s6, 6  ;;  %s455_s8 = sshll.u32 %s652_s15, 10 }
  0x23   : > { %s896_s5 = scalar_select %p762_p9, 1, 0 }
  0x24   : > { %s775_s11 = scalar_lea.hbm %s882_s0, %s455_s8  ;;  %s150_s17 = scalar_lea.vmem [#allocation2], %s444_s7 }
  0x25   : > { %s158_s21 = sshll.u32 %s150_s17, 4  ;;  %p777_p11 = pnand %p484_p0, %p36_p3  ;;  %s159_s21 = int_to_ptr.vmem [resolvable:$true] %s158_s21 }
  0x26   : > { %s147_s24 = scalar_lea.sflag [#allocation3], %s146_s6  ;;  %s556_s25 = scalar_lea.hbm %s775_s11, 1024 }
  0x27   : > { %p557_p12 = scmp.ne.s32.totalorder %s775_s11, %s556_s25  ;;  %p558_p13 = pneg %p777_p11 }
  0x28   : > { %s561_s28 = scalar_lea.hbm %s882_s0, 2048  ;;  %p562_p10 = scmp.lt.s32.totalorder %s775_s11, %s882_s0 }
  0x29   : > { %p559_p5 = pnand %p558_p13, %p557_p12  ;;  %p563_p1 = scmp.lt.s32.totalorder %s561_s28, %s556_s25 }
  0x2b   : > { %p560_p7 = pneg %p559_p5  ;;  %p564_p2 = por %p563_p1, %p562_p10 }
  0x2d   : > { %p565_p0 = pnand %p564_p2, %p560_p7 }
  0x2f   : > { %568 = shalt.err (!%p565_p0)
}
  0x30   : > { %s569_s7 = scalar_lea.vmem %s159_s21, 1024  ;;  %s655_s6 = smov [#allocation2]  }
  0x31   : > { %p570_p3 = scmp.ne.s32.totalorder %s159_s21, %s569_s7  ;;  %s574_s8 = sshll.u32 %s655_s6, 4  ;;  %s575_s8 = int_to_ptr.vmem [resolvable:$false] %s574_s8 }
  0x32   : > { %s576_s9 = scalar_lea.vmem %s575_s8, 2048  ;;  %p577_p12 = scmp.lt.s32.totalorder %s159_s21, %s575_s8 }
  0x33   : > { %p572_p6 = pnand %p570_p3, %p558_p13  ;;  %p578_p5 = scmp.lt.s32.totalorder %s576_s9, %s569_s7 }
  0x35   : > { %p573_p9 = pneg %p572_p6  ;;  %p579_p4 = por %p578_p5, %p577_p12 }
  0x37   : > { %p580_p8 = pnand %p579_p4, %p573_p9 }
  0x39   : > { %583 = shalt.err (!%p580_p8)
}
  0x3a   : > { %478 = dma.hbm_to_vmem [thread:$0]  (!%p777_p11), %s775_s11, 1024, %s159_s21, %s147_s24  }
  0x3b   : > { %p898_p7 = scmp.ne.s32.totalorder %s892_s20, 0 }
  0x3c   : > { %s798_s10 = sand.u32 (!%p898_p7), 1, %s644_s13   ;;  %p899_p6 = scmp.ne.s32.totalorder (!%p898_p7), %s890_s18, 0 }
  0x3d   : > { %167 = sbr.rel (%p898_p7) target bundleno = 452 (0x1c4), region = 32  ;;  %s448_s17 = sshll.u32 (!%p898_p7), %s798_s10, 6 }
  0x3e   : > { %s170_s25 = scalar_lea.sflag (!%p898_p7), [#allocation3], %s798_s10  ;;  %s802_s26 = scalar_lea.vmem (!%p898_p7), [#allocation2], %s448_s17 }
  0x42   : > { %627 = dma.done.wait (%p899_p6), %s170_s25, 1024  }
  0x43   : > { %629 = vsyncadd (%p899_p6), %s170_s25, 4294966272  ;;  %p900_p4 = scmp.eq.s32.totalorder %s700_s16, 0 }
  0x45   : > { %631 = dma.done.wait (%p900_p4), [#allocation6], 64   ;;  %p901_p8 = pmov %p900_p4 }
  0x46   : > { %vm231_vm0 = vcmask 1043456   ;;  %v199_v0 = vld [vmem:[%s802_s26] sm:$0xff]  ;;  %v200_v1 = vld [vmem:[%s802_s26 + $0x8] sm:$0xff]  ;;  %v201_v5 = vld [vmem:[%s802_s26 + $0x10] sm:$0xff]  ;;  %v656_v47 = vmov 0.0   ;;  %vm657_vm1 = vmmov 0   ;;  %v268_v49 = vlaneseq }
  0x47   : > { %633 = vsyncadd (%p901_p8), [#allocation6], 4294967232  ;;  %v215_v2 = vcombine.high %v199_v0, %v199_v0  ;;  %v216_v3 = vcombine.high %v200_v1, %v200_v1  ;;  %v232_v4 = vsel %vm231_vm0, %v199_v0, 0.0  ;;  %v235_v7 = vsel %vm231_vm0, %v200_v1, 0.0  ;;  %v202_v11 = vld [vmem:[%s802_s26 + $0x18] sm:$0xff]  ;;  %v203_v17 = vld [vmem:[%s802_s26 + $0x20] sm:$0xff]  ;;  %458 = vmatprep.subr.mxu0 %v656_v47  ;;  %460 = vmatprep.mubr.msk.f32.mxu0 %vm657_vm1, %v656_v47 }
  0x48   : > { %v217_v9 = vcombine.high %v201_v5, %v201_v5  ;;  %v239_v13 = vsel %vm231_vm0, %v201_v5, 0.0  ;;  %v218_v15 = vcombine.high %v202_v11, %v202_v11  ;;  %v243_v19 = vsel %vm231_vm0, %v202_v11, 0.0  ;;  %v204_v23 = vld [vmem:[%s802_s26 + $0x28] sm:$0xff]  ;;  %v205_v29 = vld [vmem:[%s802_s26 + $0x30] sm:$0xff]  ;;  %v206_v35 = vld [vmem:[%s802_s26 + $0x38] sm:$0xff]  ;;  %s452_s11 = sshll.u32 %s700_s16, 4 }
  0x49   : > { %v233_v6 = vsel %vm231_vm0, %v215_v2, 0.0  ;;  %v237_v10 = vsel %vm231_vm0, %v216_v3, 0.0  ;;  %v219_v21 = vcombine.high %v203_v17, %v203_v17  ;;  %v247_v25 = vsel %vm231_vm0, %v203_v17, 0.0  ;;  %v265_v48 = vld [vmem:[#allocation5] sm:$0xf]  ;;  %s198_s21 = scalar_lea.vmem [#allocation7], %s798_s10  ;;  %s845_s28 = scalar_lea.hbm %s885_s3, %s452_s11 }
  0x4a   : > { %v234_v8 = vadd.f32 %v233_v6, %v232_v4  ;;  %v241_v16 = vsel %vm231_vm0, %v217_v9, 0.0  ;;  %v245_v22 = vsel %vm231_vm0, %v218_v15, 0.0  ;;  %v220_v27 = vcombine.high %v204_v23, %v204_v23  ;;  %459 = vmatpush3.msk.msra.mxu0 %vm231_vm0, %v265_v48  ;;  %v266_v55 = vld [vmem:[%s884_s2] sm:$0x1]  ;;  %s364_s22 = sshll.u32 %s198_s21, 4  ;;  %s352_s29 = scalar_lea.sflag [#allocation4], %s798_s10  ;;  %s365_s22 = int_to_ptr.vmem [resolvable:$true] %s364_s22 }
  0x4b   : > { %v249_v28 = vsel %vm231_vm0, %v219_v21, 0.0  ;;  %v251_v31 = vsel %vm231_vm0, %v204_v23, 0.0  ;;  %v221_v33 = vcombine.high %v205_v29, %v205_v29  ;;  %v255_v37 = vsel %vm231_vm0, %v205_v29, 0.0  ;;  %s584_s30 = scalar_lea.vmem %s365_s22, 16  ;;  %p902_p11 = scmp.ne.s32.totalorder %s896_s5, 0 }
  0x4c   : > { %v236_v12 = vadd.f32 %v235_v7, %v234_v8  ;;  %v253_v34 = vsel %vm231_vm0, %v220_v27, 0.0  ;;  %v222_v39 = vcombine.high %v206_v35, %v206_v35  ;;  %v259_v42 = vsel %vm231_vm0, %v206_v35, 0.0  ;;  %p585_p9 = scmp.ne.s32.totalorder %s365_s22, %s584_s30  ;;  %s658_s7 = smov [#allocation7]  }
  0x4d   : > { %v257_v40 = vsel %vm231_vm0, %v221_v33, 0.0  ;;  %v269_v50 = vand.u32 127, %v268_v49  ;;  %v271_v51 = vshrl.u32 %v268_v49, 7  ;;  %vm274_vm2 = vcmask 31744   ;;  %s588_s16 = sshll.u32 %s658_s7, 4  ;;  %s589_s16 = int_to_ptr.vmem [resolvable:$false] %s588_s16 }
  0x4e   : > { %v238_v14 = vadd.f32 %v237_v10, %v236_v12  ;;  %v261_v44 = vsel %vm231_vm0, %v222_v39, 0.0  ;;  %p586_p13 = pnand %p585_p9, %p902_p11  ;;  %s590_s6 = scalar_lea.vmem %s589_s16, 32 }
  0x4f   : > { %v272_v52 = vsub.s32 %v269_v50, %v271_v51  ;;  %p591_p1 = scmp.lt.s32.totalorder %s365_s22, %s589_s16  ;;  %p592_p2 = scmp.lt.s32.totalorder %s590_s6, %s584_s30 }
  0x50   : > { %v240_v18 = vadd.f32 %v239_v13, %v238_v14  ;;  %p587_p10 = pneg %p586_p13 }
  0x51   : > { %p593_p0 = por %p592_p2, %p591_p1 }
  0x52   : > { %v242_v20 = vadd.f32 %v241_v16, %v240_v18 }
  0x53   : > { %p594_p3 = pnand %p593_p0, %p587_p10 }
  0x54   : > { %v244_v24 = vadd.f32 %v243_v19, %v242_v20 }
  0x56   : > { %v246_v26 = vadd.f32 %v245_v22, %v244_v24 }
  0x58   : > { %v248_v30 = vadd.f32 %v247_v25, %v246_v26 }
  0x5a   : > { %v250_v32 = vadd.f32 %v249_v28, %v248_v30 }
  0x5c   : > { %v252_v36 = vadd.f32 %v251_v31, %v250_v32 }
  0x5e   : > { %v254_v38 = vadd.f32 %v253_v34, %v252_v36 }
  0x60   : > { %v256_v41 = vadd.f32 %v255_v37, %v254_v38 }
  0x62   : > { %v258_v43 = vadd.f32 %v257_v40, %v256_v41 }
  0x64   : > { %v260_v45 = vadd.f32 %v259_v42, %v258_v43 }
  0x66   : > { %v262_v46 = vadd.f32 %v261_v44, %v260_v45 }
  0x68   : > { %263 = vadd.xlane.f32.xlu0 %v262_v46 }
  0xf1   : > { %v264_v53 = vpop.xlane.xlu0 %263 }
  0xf2   : > { %v273_v54 = vrot.slane %v264_v53, %v272_v52 }
  0xf4   : > { %461 = vmatmul.mubr.msk.f32.vlgmr.msra.gmra.mxu0 %vm274_vm2, %v273_v54 }
 0x1b4   : > { %v346_v56 = vpop.f32.mrf.mxu0 }
 0x1b5   : > { %v347_v57 = vadd.f32 %v346_v56, %v266_v55 }
 0x1b6   : > { %v462_v58 = vpop.f32.mrf.mxu0 }
 0x1b7   : > { %350 = vst [vmem:[%s198_s21] sm:$0x1] %v347_v57 }
 0x1b8   : > { %597 = shalt.err (!%p594_p3)
}
 0x1b9   : > { %s598_s8 = scalar_lea.hbm %s845_s28, 16  ;;  %s602_s17 = scalar_lea.hbm %s885_s3, 32 }
 0x1ba   : > { %p599_p12 = scmp.ne.s32.totalorder %s845_s28, %s598_s8  ;;  %p603_p6 = scmp.lt.s32.totalorder %s845_s28, %s885_s3 }
 0x1bb   : > { %p604_p4 = scmp.lt.s32.totalorder %s602_s17, %s598_s8 }
 0x1bc   : > { %p600_p5 = pnand %p599_p12, %p902_p11 }
 0x1bd   : > { %p605_p8 = por %p604_p4, %p603_p6 }
 0x1be   : > { %p601_p7 = pneg %p600_p5 }
 0x1c0   : > { %p606_p9 = pnand %p605_p8, %p601_p7 }
 0x1c2   : > { %609 = shalt.err (!%p606_p9)
}
 0x1c3   : > { %469 = dma.vmem_to_hbm [thread:$0]  (%p902_p11), %s365_s22, 16, %s845_s28, %s352_s29  }
 0x1c4 PF: > { %s376_s18 = sand.u32 1, %s640_s12   ;;  %p903_p13 = scmp.ne.s32.totalorder %s891_s19, 0 }
 0x1c5   : > { %p904_p10 = scmp.ge.s32.totalorder %s652_s15, 2  ;;  %s377_s20 = scalar_lea.sflag [#allocation4], %s376_s18 }
 0x1c7   : > { %p480_p1 = pnand %p904_p10, %p903_p13 }
 0x1c9   : > { %p481_p2 = pneg %p480_p1 }
 0x1cb   : > { %635 = dma.done.wait (%p481_p2), %s377_s20, 16  }
 0x1cc   : > { %637 = vsyncadd (%p481_p2), %s377_s20, 4294967280  ;;  %p17_p0 = scmp.ge.s32.totalorder %s727_s23, 4   ;;  %s905_s12 = smov %s644_s13 }
 0x1cd   : > { %s906_s13 = smov %s648_s14  ;;  %s907_s14 = smov %s754_s4 }
 0x1ce   : > { %s908_s15 = smov %s727_s23  ;;  %19 = sbr.rel (!%p17_p0) target bundleno = 6 (0x6), region = 81 }
 0x1d3   :  { %381 = vsyncpa [#allocation3], 1 }
 0x1d4   :  { %383 = vsyncpa [#allocation3 + $0x1], 1 }
 0x1d5   :  { %384 = vsyncpa [#allocation6], 1 }
 0x1d6   :  { %385 = vsyncpa [#allocation4], 1 }
 0x1d7   :  { %387 = vsyncpa [#allocation4 + $0x1], 1 }

</bundles_post_ra>
